<compile_context>
chip_gen: v7x
topology: tpu7x:2x2x1
jax: 0.10.0
libtpu: 0.0.40
codegen_flags: <defaults>
</compile_context>

<pallas_src>
import functools

import jax
import jax.numpy as jnp
from jax import lax
from jax.experimental import pallas as pl
from jax.experimental.pallas import tpu as pltpu


# ---------------------------------------------------------------------------
# Pallas kernel: one (C, TM) tile of spatial positions vs. the full codebook,
# processed in TC-lane chunks to keep all (K, TC) temporaries in registers.
# ---------------------------------------------------------------------------
def _vq_kernel(x_ref, dict_ref, dnorm_half_ref, emb_ref, idx_ref, *, tc):
    # x_ref:          (C, TM)        float32  -- spatial positions on lanes
    # dict_ref:       (K, C)         float32  -- full codebook
    # dnorm_half_ref: (K, 1)         float32  -- precomputed 0.5*||d_k||^2
    # emb_ref:        (C, TM)        float32  -- quantized output
    # idx_ref:        (1, 1, 1, TM)  int32    -- argmin codebook indices
    d = dict_ref[...]                                   # (K, C)
    dn_half = dnorm_half_ref[...]                       # (K, 1)
    k = d.shape[0]
    tm = x_ref.shape[1]
    n_chunks = tm // tc

    # Hoisted (K, 1) iota; broadcasts along lanes inside the chunk loop.
    iota_k = lax.broadcasted_iota(jnp.int32, (k, 1), 0)

    def chunk(c_i, carry):
        c0 = pl.multiple_of(c_i * tc, 128)
        x = x_ref[:, pl.ds(c0, tc)]                     # (C, TC)

        # Argmin-equivalent half-distances: 0.5*||d||^2 - d.x (||x||^2 term is
        # constant along the codebook axis, so it cannot change the argmin).
        dots = lax.dot_general(
            d, x, (((1,), (0,)), ((), ())),
            preferred_element_type=jnp.float32)          # (K, TC) on MXU
        dists = dn_half - dots                           # (K, TC)

        # First-minimum index along the codebook (sublane) axis; lowest index
        # wins on ties, matching torch.argmin.
        dmin = jnp.min(dists, axis=0, keepdims=True)     # (1, TC)
        idxs = jnp.min(jnp.where(dists == dmin, iota_k, k),
                       axis=0, keepdims=True)            # (1, TC)

        # Codebook lookup as an exact one-hot matmul: emb = d.T @ onehot.
        onehot = (iota_k == idxs).astype(jnp.float32)    # (K, TC)
        emb = lax.dot_general(
            d, onehot, (((0,), (0,)), ((), ())),
            preferred_element_type=jnp.float32)          # (C, TC)

        emb_ref[:, pl.ds(c0, tc)] = emb
        idx_ref[0, 0, :, pl.ds(c0, tc)] = idxs.astype(jnp.int32)
        return carry

    lax.fori_loop(0, n_chunks, chunk, None, unroll=True)


# ---------------------------------------------------------------------------
# VQ forward (glue + pallas_call)
# ---------------------------------------------------------------------------
def _round_up(a, b):
    return (a + b - 1) // b * b


def _choose_chunk(tm, max_tc=512):
    """Largest multiple of 128 <= max_tc that divides tm."""
    t = min(max_tc, tm)
    while tm % t:
        t -= 128
    return t


@functools.partial(jax.jit, static_argnames=("tile_m",))
def vq_forward(x_nchw, dictionary, *, tile_m=4096):
    """VQ.forward: returns (embedded [NCHW], embedded_pt [NCHW], idxs [NHW])."""
    n, c, h, w = x_nchw.shape
    k, c2 = dictionary.shape
    assert c == c2
    assert c % 8 == 0, "latent channel dim must be a multiple of 8 (sublanes)"
    hw = h * w

    # DMA tile: large (amortizes per-step overhead), lane-dense, bounded by
    # the (128-padded) spatial extent so padding waste stays small.
    tm = min(_round_up(tile_m, 128), _round_up(hw, 128))
    hw_pad = _round_up(hw, tm)
    n_tiles = hw_pad // tm
    tc = _choose_chunk(tm)           # in-kernel compute chunk (no vreg spills)

    # NCHW -> (N*C, H*W): a pure view, no transpose, no extra HBM traffic.
    x2d = x_nchw.reshape(n * c, hw).astype(jnp.float32)
    if hw_pad != hw:
        x2d = jnp.pad(x2d, ((0, 0), (0, hw_pad - hw)))

    d32 = dictionary.astype(jnp.float32)
    dnorm_half = 0.5 * jnp.sum(d32 * d32, axis=-1, keepdims=True)  # (K, 1)

    # VMEM: double-buffered (C,TM) in + (C,TM) out + idx + codebook ~ 2 MB at
    # TM=4096 -- comfortably under the default scoped limit on v5e/v6e/v7x.
    emb2d, idx4 = pl.pallas_call(
        functools.partial(_vq_kernel, tc=tc),
        out_shape=(
            jax.ShapeDtypeStruct((n * c, hw_pad), jnp.float32),
            jax.ShapeDtypeStruct((n, n_tiles, 1, tm), jnp.int32),
        ),
        grid_spec=pltpu.PrefetchScalarGridSpec(
            num_scalar_prefetch=0,
            grid=(n, n_tiles),
            in_specs=[
                pl.BlockSpec((c, tm), lambda i, j: (i, j)),        # x tile
                pl.BlockSpec((k, c), lambda i, j: (0, 0)),         # codebook
                pl.BlockSpec((k, 1), lambda i, j: (0, 0)),         # 0.5*||d||^2
            ],
            out_specs=[
                pl.BlockSpec((c, tm), lambda i, j: (i, j)),        # embedded
                pl.BlockSpec((1, 1, 1, tm), lambda i, j: (i, j, 0, 0)),  # idx
            ],
        ),
        compiler_params=pltpu.CompilerParams(
            dimension_semantics=("parallel", "parallel")),
    )(x2d, d32, dnorm_half)

    idx2d = idx4.reshape(n, hw_pad)
    if hw_pad != hw:
        emb2d = emb2d[:, :hw]
        idx2d = idx2d[:, :hw]

    embedded = emb2d.reshape(n, c, h, w)     # view, no transpose
    idxs = idx2d.reshape(n, h, w)
    # Straight-through estimator: embedded.detach() + (x - x.detach()) equals
    # `embedded` in the forward pass (no backward wired up here).
    embedded_pt = embedded
    return embedded, embedded_pt, idxs


# ---------------------------------------------------------------------------
# Encoder.forward
# ---------------------------------------------------------------------------
def encode(x, x_thermal):
    # TODO(synk): Encoder.encode() is abstract (raises NotImplementedError in
    # the reference); subclasses define it.  Identity pass-through of x is used
    # so the VQ hot path (the module's only parameters) is exercised.
    del x_thermal
    return x


def encoder_forward(x, x_thermal, dictionary):
    return vq_forward(encode(x, x_thermal), dictionary)


# ---------------------------------------------------------------------------
# Demo / self-check
# ---------------------------------------------------------------------------
if __name__ == "__main__":
    num_channels = 32   # latent codebook channel dim
    num_latents = 64    # codebook entries
    N, H, W = 2, 16, 16  # H*W = 256 (one lane-dense tile per batch element)

    key = jax.random.PRNGKey(0)
    k_x, k_t, k_d = jax.random.split(key, 3)
    x = jax.random.normal(k_x, (N, num_channels, H, W), dtype=jnp.float32)
    x_thermal = jax.random.normal(k_t, (N, num_channels, H, W), dtype=jnp.float32)
    dictionary = jax.random.normal(k_d, (num_latents, num_channels),
                                   dtype=jnp.float32)

    embedded, embedded_pt, idxs = encoder_forward(x, x_thermal, dictionary)
    jax.block_until_ready((embedded, embedded_pt, idxs))

    # ---- pure-JAX reference checks ---------------------------------------
    x_cl = jnp.transpose(x, (0, 2, 3, 1)).reshape(-1, num_channels)   # (M, C)
    idx_flat = idxs.reshape(-1)

    # 1. indices are valid codebook entries
    assert bool(jnp.all((idx_flat >= 0) & (idx_flat < num_latents))), "idx range"

    # 2. the chosen codeword is the nearest one (true squared distance of the
    #    kernel's choice matches the true minimum, up to float tolerance)
    true_d = jnp.sum((x_cl[:, None, :] - dictionary[None, :, :]) ** 2, axis=-1)
    d_choice = jnp.take_along_axis(true_d, idx_flat[:, None], axis=1)[:, 0]
    d_best = jnp.min(true_d, axis=1)
    assert bool(jnp.all(d_choice <= d_best + 1e-3)), "non-nearest codeword chosen"

    # 3. embedded output is the codebook rows the kernel selected
    emb_ref = jnp.transpose(
        dictionary[idx_flat].reshape(N, H, W, num_channels), (0, 3, 1, 2))
    assert bool(jnp.allclose(embedded, emb_ref, atol=1e-5, rtol=0)), "embed mismatch"

    # 4. straight-through output equals the quantized output in forward
    assert bool(jnp.array_equal(embedded_pt, embedded)), "straight-through mismatch"

    print("KERNEL_OK")
</pallas_src>

<mosaic_0001>
module attributes {stable_mosaic.version = 11 : i64} {
  func.func @_vq_kernel(%arg0: i32, %arg1: i32, %arg2: memref<32x256xf32, #tpu.memory_space<vmem>>, %arg3: memref<64x32xf32, #tpu.memory_space<vmem>>, %arg4: memref<64x1xf32, #tpu.memory_space<vmem>>, %arg5: memref<32x256xf32, #tpu.memory_space<vmem>>, %arg6: memref<1x1x1x256xi32, #tpu.memory_space<vmem>>) attributes {dimension_semantics = [#tpu.dimension_semantics<parallel>, #tpu.dimension_semantics<parallel>], iteration_bounds = array<i64: 2, 1>, scalar_prefetch = 0 : i64, scratch_operands = 0 : i64, tpu.core_type = #tpu.core_type<tc>, window_params = [{transform_indices = @transform_0, window_bounds = array<i64: 32, 256>}, {pipeline_mode = #tpu.pipeline_mode<synchronous>, transform_indices = @transform_1, window_bounds = array<i64: 64, 32>}, {pipeline_mode = #tpu.pipeline_mode<synchronous>, transform_indices = @transform_2, window_bounds = array<i64: 64, 1>}, {transform_indices = @transform_3, window_bounds = array<i64: 32, 256>}, {transform_indices = @transform_4, window_bounds = array<i64: 1, 1, 1, 256>}]} {
    %c0 = arith.constant 0 : index
    %c0_0 = arith.constant 0 : index
    %0 = vector.load %arg3[%c0, %c0_0] : memref<64x32xf32, #tpu.memory_space<vmem>>, vector<64x32xf32>
    %c0_1 = arith.constant 0 : index
    %c0_2 = arith.constant 0 : index
    %1 = vector.load %arg4[%c0_1, %c0_2] : memref<64x1xf32, #tpu.memory_space<vmem>>, vector<64x1xf32>
    %2 = tpu.iota {dimensions = array<i32: 0>} : vector<64x1xi32>
    %c0_i32 = arith.constant 0 : i32
    %c256_i32 = arith.constant 256 : i32
    %3 = arith.muli %c0_i32, %c256_i32 : i32
    %4 = tpu.assume_multiple %3, 128 : i32
    %c0_3 = arith.constant 0 : index
    %5 = arith.index_cast %4 : i32 to index
    %6 = vector.load %arg2[%c0_3, %5] : memref<32x256xf32, #tpu.memory_space<vmem>>, vector<32x256xf32>
    %cst = arith.constant dense<0.000000e+00> : vector<64x256xf32>
    %7 = tpu.matmul %0, %6, %cst {dimension_numbers = #tpu.dot_dimension_numbers<[1], [0], [0], [1], [0, 0, 1, 1], [], []>} : vector<64x32xf32>, vector<32x256xf32>, vector<64x256xf32> -> vector<64x256xf32>
    %8 = vector.broadcast %1 : vector<64x1xf32> to vector<64x256xf32>
    %9 = arith.subf %8, %7 : vector<64x256xf32>
    %cst_4 = arith.constant dense<0x7F800000> : vector<256xf32>
    %10 = vector.multi_reduction <minimumf>, %9, %cst_4 [0] : vector<64x256xf32> to vector<256xf32>
    %11 = vector.shape_cast %10 : vector<256xf32> to vector<1x256xf32>
    %12 = vector.broadcast %11 : vector<1x256xf32> to vector<64x256xf32>
    %13 = arith.cmpf oeq, %9, %12 : vector<64x256xf32>
    %c64_i32 = arith.constant 64 : i32
    %14 = vector.shape_cast %2 : vector<64x1xi32> to vector<64x1xi32>
    %15 = vector.broadcast %14 : vector<64x1xi32> to vector<64x256xi32>
    %16 = vector.broadcast %c64_i32 : i32 to vector<64x256xi32>
    %17 = arith.select %13, %15, %16 : vector<64x256xi1>, vector<64x256xi32>
    %cst_5 = arith.constant dense<2147483647> : vector<256xi32>
    %18 = vector.multi_reduction <minsi>, %17, %cst_5 [0] : vector<64x256xi32> to vector<256xi32>
    %19 = vector.shape_cast %18 : vector<256xi32> to vector<1x256xi32>
    %20 = vector.broadcast %2 : vector<64x1xi32> to vector<64x256xi32>
    %21 = vector.broadcast %19 : vector<1x256xi32> to vector<64x256xi32>
    %22 = arith.cmpi eq, %20, %21 : vector<64x256xi32>
    %23 = arith.extui %22 : vector<64x256xi1> to vector<64x256xi32>
    %24 = arith.sitofp %23 : vector<64x256xi32> to vector<64x256xf32>
    %cst_6 = arith.constant dense<0.000000e+00> : vector<32x256xf32>
    %25 = tpu.matmul %0, %24, %cst_6 {dimension_numbers = #tpu.dot_dimension_numbers<[0], [0], [1], [1], [0, 1, 1, 1], [], []>} : vector<64x32xf32>, vector<64x256xf32>, vector<32x256xf32> -> vector<32x256xf32>
    %c0_7 = arith.constant 0 : index
    %26 = arith.index_cast %4 : i32 to index
    %27 = vector.load %arg5[%c0_7, %26] : memref<32x256xf32, #tpu.memory_space<vmem>>, vector<32x256xf32>
    tpu.vector_store %arg5[%c0_7, %26], %25 {strides = array<i32>} : memref<32x256xf32, #tpu.memory_space<vmem>>, vector<32x256xf32>,
    %c0_8 = arith.constant 0 : index
    %c0_9 = arith.constant 0 : index
    %c0_10 = arith.constant 0 : index
    %28 = arith.index_cast %4 : i32 to index
    %29 = vector.load %arg6[%c0_8, %c0_9, %c0_10, %28] : memref<1x1x1x256xi32, #tpu.memory_space<vmem>>, vector<1x1x1x256xi32>
    %30 = vector.shape_cast %29 : vector<1x1x1x256xi32> to vector<1x256xi32>
    %31 = vector.shape_cast %19 : vector<1x256xi32> to vector<1x1x1x256xi32>
    tpu.vector_store %arg6[%c0_8, %c0_9, %c0_10, %28], %31 {strides = array<i32>} : memref<1x1x1x256xi32, #tpu.memory_space<vmem>>, vector<1x1x1x256xi32>,
    %c1_i32 = arith.constant 1 : i32
    return
  }
  func.func @transform_0(%arg0: i32, %arg1: i32) -> (i32, i32) {
    %c0_i32 = arith.constant 0 : i32
    return %arg0, %arg1 : i32, i32
  }
  func.func @transform_1(%arg0: i32, %arg1: i32) -> (i32, i32) {
    %c0_i32 = arith.constant 0 : i32
    %c0_i32_0 = arith.constant 0 : i32
    %c0_i32_1 = arith.constant 0 : i32
    return %c0_i32, %c0_i32_0 : i32, i32
  }
  func.func @transform_2(%arg0: i32, %arg1: i32) -> (i32, i32) {
    %c0_i32 = arith.constant 0 : i32
    %c0_i32_0 = arith.constant 0 : i32
    %c0_i32_1 = arith.constant 0 : i32
    return %c0_i32, %c0_i32_0 : i32, i32
  }
  func.func @transform_3(%arg0: i32, %arg1: i32) -> (i32, i32) {
    %c0_i32 = arith.constant 0 : i32
    return %arg0, %arg1 : i32, i32
  }
  func.func @transform_4(%arg0: i32, %arg1: i32) -> (i32, i32, i32, i32) {
    %c0_i32 = arith.constant 0 : i32
    %c0_i32_0 = arith.constant 0 : i32
    %c0_i32_1 = arith.constant 0 : i32
    return %arg0, %arg1, %c0_i32, %c0_i32_0 : i32, i32, i32, i32
  }
}

</mosaic_0001>

<bundles_post_ra>
// kernel: vq_forward.1
= control target key start
LH: loop header
LB: loop body
LE: loop exit
PB: predicated region body
PF: predicated region fallthrough
CT: control target
= control target key end

     0   :  { %s1111_s15 = smov 0   ;;  %s1113_s16 = smov 0   ;;  %s1349_s0 = inlined_call_operand.vmem [shape: f32[64,256], index: 0, kind: input, shape index: {}]   ;;  %s1350_s1 = inlined_call_operand.vmem [shape: f32[64,32], index: 1, kind: input, shape index: {}]   ;;  %s1351_s2 = inlined_call_operand.vmem [shape: f32[64,1], index: 2, kind: input, shape index: {}]   ;;  %s1352_s3 = inlined_call_operand.vmem [shape: f32[64,256], index: 3, kind: output, shape index: {0}]   ;;  %s1353_s4 = inlined_call_operand.vmem [shape: s32[2,1,1,256], index: 4, kind: output, shape index: {1}]  }
   0x1   :  { %s1115_s17 = smov 0  }
   0x2 LB: > { %s27_s18 = sadd.s32 1, %s1076_s16  ;;  %p948_p0 = scmp.ge.s32.totalorder %s1080_s17, 1  ;;  %s1080_s17 = sphi %s1115_s17, %s15_s17   ;;  %s1076_s16 = sphi %s1113_s16, %s1355_s16   ;;  %s1072_s15 = sphi %s1111_s15, %s1354_s15  }
   0x3   : > { %p29_p1 = scmp.ge.s32.totalorder %s27_s18, 2  ;;  %p190_p2 = scmp.lt.s32.totalorder %s1080_s17, 3 }
   0x5   : > { %s1357_s18 = smov (%p29_p1, %s27_s18), 0  ;;  %p191_p3 = pnand %p948_p0, %p190_p2 }
   0x6   : > { %s949_s19 = sshll.u32 (!%p191_p3), %s1072_s15, 2  ;;  %v1082_v0 = vmov (!%p191_p3), 0.0   ;;  %v1083_v1 = vmov (!%p191_p3), 0   ;;  %v274_v2 = vld [vmem:[%s1351_s2] sm:$0xff] (!%p191_p3)  ;;  %v276_v3 = vld [vmem:[%s1351_s2 + $0x10] sm:$0xff] (!%p191_p3)  ;;  %v275_v4 = vld [vmem:[%s1351_s2 + $0x8] sm:$0xff] (!%p191_p3) }
   0x7   : > { %194 = sbr.rel (%p191_p3) target bundleno = 560 (0x230), region = 32  ;;  %p236_p4 = scmp.lt.s32.totalorder (!%p191_p3), %s949_s19, 7  ;;  %388 = vmatprep.mubr.f32.mxu0 (!%p191_p3), %v1082_v0  ;;  %754 = vmatprep.mubr.f32.mxu1 (!%p191_p3), %v1082_v0  ;;  %v277_v5 = vld [vmem:[%s1351_s2 + $0x18] sm:$0xff] (!%p191_p3)  ;;  %v278_v6 = vld [vmem:[%s1351_s2 + $0x20] sm:$0xff] (!%p191_p3)  ;;  %v279_v18 = vld [vmem:[%s1351_s2 + $0x28] sm:$0xff] (!%p191_p3)  ;;  %vm299_vm0 = vcmask (!%p191_p3), 261120  }
   0x8   : > { %1056 = vset.pattern.permute.xlu0 (!%p191_p3), %v1083_v1  ;;  %1057 = vset.pattern.permute.xlu1 (!%p191_p3), %v1083_v1  ;;  %v280_v20 = vld [vmem:[%s1351_s2 + $0x30] sm:$0xff] (!%p191_p3)  ;;  %v281_v21 = vld [vmem:[%s1351_s2 + $0x38] sm:$0xff] (!%p191_p3)  ;;  %v266_v22 = vld [vmem:[%s1350_s1] sm:$0xff] (!%p191_p3)  ;;  %p258_p5 = scmp.lt.s32.totalorder (!%p191_p3), %s1072_s15, 1 }
   0x9   : > { %439 = vperm.xlu0 (!%p191_p3), %1056, %v274_v2   ;;  %449 = vperm.xlu1 (!%p191_p3), %1057, %v276_v3   ;;  %v267_v23 = vld [vmem:[%s1350_s1 + $0x8] sm:$0xff] (!%p191_p3)  ;;  %v268_v24 = vld [vmem:[%s1350_s1 + $0x10] sm:$0xff] (!%p191_p3)  ;;  %v269_v25 = vld [vmem:[%s1350_s1 + $0x18] sm:$0xff] (!%p191_p3) }
   0xa   : > { %v270_v26 = vld [vmem:[%s1350_s1 + $0x20] sm:$0xff] (!%p191_p3)  ;;  %v271_v27 = vld [vmem:[%s1350_s1 + $0x28] sm:$0xff] (!%p191_p3)  ;;  %v272_v28 = vld [vmem:[%s1350_s1 + $0x30] sm:$0xff] (!%p191_p3) }
   0xb   : > { %v273_v29 = vld [vmem:[%s1350_s1 + $0x38] sm:$0xff] (!%p191_p3) }
   0xd   : > { %444 = vperm.xlu0 (!%p191_p3), %1056, %v275_v4   ;;  %454 = vperm.xlu1 (!%p191_p3), %1057, %v277_v5  }
   0xe   : > { %s1359_s19 = smov (!%p236_p4, %s949_s19), 7  ;;  %s1361_s15 = smov (!%p258_p5, %s1072_s15), 1 }
   0xf   : > { %s1002_s26 = sshll.u32 %s1359_s19, 4  ;;  %s955_s10 = sshll.u32 %s1361_s15, 1 }
  0x10   : > { %s243_s5 = scalar_lea.vmem %s1349_s0, %s1002_s26  ;;  %s265_s13 = scalar_lea.vmem %s1353_s4, %s955_s10 }
  0x11   : > { %v292_v7 = vld [vmem:[%s243_s5 + $0x8] sm:$0xff]  ;;  %v294_v8 = vld [vmem:[%s243_s5 + $0x18] sm:$0xff]  ;;  %v291_v9 = vld [vmem:[%s243_s5] sm:$0xff]  ;;  %459 = vperm.xlu0 %1056, %v278_v6   ;;  %464 = vperm.xlu1 %1057, %v279_v18   ;;  %s255_s20 = scalar_lea.vmem %s1352_s3, %s1002_s26 }
  0x12   : > { %v1004_v10 = vpack.c.bf16 %v294_v8, %v292_v7  ;;  %v293_v11 = vld [vmem:[%s243_s5 + $0x10] sm:$0xff]  ;;  %v296_v12 = vld [vmem:[%s243_s5 + $0x28] sm:$0xff]  ;;  %v298_v13 = vld [vmem:[%s243_s5 + $0x38] sm:$0xff] }
  0x13   : > { %v1006_v14 = vpack.c.bf16 %v293_v11, %v291_v9  ;;  %v1008_v15 = vpack.c.bf16 %v298_v13, %v296_v12  ;;  %v295_v16 = vld [vmem:[%s243_s5 + $0x20] sm:$0xff]  ;;  %v297_v17 = vld [vmem:[%s243_s5 + $0x30] sm:$0xff] }
  0x14   : > { %1005 = vmatprep.subr.bf16.mxu0 %v1004_v10  ;;  %v1010_v19 = vpack.c.bf16 %v297_v17, %v295_v16 }
  0x15   : > { %1007 = vmatpush1.bf16.msra.mxu0 %v1006_v14  ;;  %469 = vperm.xlu0 %1056, %v280_v20  }
  0x16   : > { %1009 = vmatprep.subr.bf16.mxu0 %v1008_v15  ;;  %474 = vperm.xlu1 %1057, %v281_v21  }
  0x19   : > { %1011 = vmatpush1.bf16.msra.mxu0 %v1010_v19 }
  0x1c   : > { %956 = vmatmul.mubr.msk.f32.vlgmr.msra.gmra.mrb[0].mxu0 %vm299_vm0, %v266_v22 }
  0x1d   : > { %394 = vmatprep.mubr.f32.mxu0 %v1082_v0 }
  0x20   : > { %957 = vmatmul.mubr.msk.f32.gmra.mrb[2].mxu0 %vm299_vm0, %v267_v23 }
  0x21   : > { %400 = vmatprep.mubr.f32.mxu0 %v1082_v0 }
  0x24   : > { %958 = vmatmul.mubr.msk.f32.gmra.mrb[4].mxu0 %vm299_vm0, %v268_v24 }
  0x25   : > { %406 = vmatprep.mubr.f32.mxu0 %v1082_v0 }
  0x28   : > { %959 = vmatmul.mubr.msk.f32.gmra.mrb[6].mxu0 %vm299_vm0, %v269_v25 }
  0x29   : > { %412 = vmatprep.mubr.f32.mxu0 %v1082_v0 }
  0x2c   : > { %960 = vmatmul.mubr.msk.f32.gmra.mrb[8].mxu0 %vm299_vm0, %v270_v26 }
  0x2d   : > { %418 = vmatprep.mubr.f32.mxu0 %v1082_v0 }
  0x30   : > { %961 = vmatmul.mubr.msk.f32.gmra.mrb[10].mxu0 %vm299_vm0, %v271_v27 }
  0x31   : > { %424 = vmatprep.mubr.f32.mxu0 %v1082_v0 }
  0x33   : > { %645 = vxpose.xlu0.b32.start [1/8] (short) (narrow) %v266_v22, 32  ;;  %v282_v22 = vlaneseq }
  0x34   : > { %962 = vmatmul.mubr.msk.f32.gmra.mrb[12].mxu0 %vm299_vm0, %v272_v28 }
  0x35   : > { %430 = vmatprep.mubr.f32.mxu0 %v1082_v0 }
  0x37   : > { %646 = vxpose.xlu0.b32.cont [2/8] (short) (narrow) %v267_v23, 32 }
  0x38   : > { %963 = vmatmul.mubr.msk.f32.gmra.mrb[14].mxu0 %vm299_vm0, %v273_v29 }
  0x3b   : > { %647 = vxpose.xlu0.b32.cont [3/8] (short) (narrow) %v268_v24, 32 }
  0x3f   : > { %648 = vxpose.xlu0.b32.cont [4/8] (short) (narrow) %v269_v25, 32 }
  0x43   : > { %649 = vxpose.xlu0.b32.cont [5/8] (short) (narrow) %v270_v26, 32 }
  0x47   : > { %650 = vxpose.xlu0.b32.cont [6/8] (short) (narrow) %v271_v27, 32  ;;  %v1242_v27 = vshrl.u32 %v282_v22, 7 }
  0x4b   : > { %651 = vxpose.xlu0.b32.cont [7/8] (short) (narrow) %v272_v28, 32 }
  0x4f   : > { %652 = vxpose.xlu0.b32.end [8/8] (short) (narrow) %v273_v29, 32 }
  0x88   : > { %v440_v32 = vpop.permute.xlu0 %439  ;;  %v450_v35 = vpop.permute.xlu1 %449 }
  0x8c   : > { %v445_v41 = vpop.permute.xlu0 %444  ;;  %v455_v44 = vpop.permute.xlu1 %454 }
  0x90   : > { %v460_v53 = vpop.permute.xlu0 %459  ;;  %v465_v60 = vpop.permute.xlu1 %464 }
  0x94   : > { %v470_v4 = vpop.permute.xlu0 %469 }
  0x95   : > { %v475_v11 = vpop.permute.xlu1 %474 }
  0xef   : > { %v390_v30 = vpop.f32.mrb[0].mxu0 }
  0xf0   : > { %v392_v31 = vpop.f32.mrb[1].mxu0  ;;  %v1205_v37 = vsub.f32 %v440_v32, %v390_v30 }
  0xf1   : > { %v1209_v40 = vsub.f32 %v440_v32, %v392_v31  ;;  %v1245_v32 = vadd.s32 8, %v1242_v27 }
  0xf3   : > { %v396_v33 = vpop.f32.mrb[2].mxu0 }
  0xf4   : > { %v398_v34 = vpop.f32.mrb[3].mxu0  ;;  %v1217_v47 = vsub.f32 %v445_v41, %v396_v33 }
  0xf5   : > { %v1221_v50 = vsub.f32 %v445_v41, %v398_v34  ;;  %v1248_v34 = vadd.s32 16, %v1242_v27  ;;  %v1257_v41 = vadd.s32 40, %v1242_v27 }
  0xf7   : > { %v402_v36 = vpop.f32.mrb[4].mxu0 }
  0xf8   : > { %v1207_v38 = vsub.f32 %v450_v35, %v402_v36  ;;  %v404_v39 = vpop.f32.mrb[5].mxu0  ;;  %v1254_v36 = vadd.s32 32, %v1242_v27 }
  0xf9   : > { %v1211_v42 = vsub.f32 %v450_v35, %v404_v39  ;;  %v1251_v35 = vadd.s32 24, %v1242_v27 }
  0xfa   : > { %v493_v43 = vmin.f32 %v1205_v37, %v1207_v38 }
  0xfb   : > { %v506_v45 = vmin.f32 %v1209_v40, %v1211_v42  ;;  %v408_v46 = vpop.f32.mrb[6].mxu0 }
  0xfc   : > { %v1219_v48 = vsub.f32 %v455_v44, %v408_v46  ;;  %v410_v49 = vpop.f32.mrb[7].mxu0 }
  0xfd   : > { %v1223_v51 = vsub.f32 %v455_v44, %v410_v49  ;;  %v1263_v44 = vadd.s32 56, %v1242_v27 }
  0xfe   : > { %v494_v52 = vmin.f32 %v1217_v47, %v1219_v48 }
  0xff   : > { %v507_v54 = vmin.f32 %v1221_v50, %v1223_v51  ;;  %v414_v55 = vpop.f32.mrb[8].mxu0 }
 0x100   : > { %v485_v56 = vsub.f32 %v460_v53, %v414_v55  ;;  %v416_v57 = vpop.f32.mrb[9].mxu0 }
 0x101   : > { %v1229_v58 = vsub.f32 %v460_v53, %v416_v57 }
 0x102   : > { %v495_v59 = vmin.f32 %v493_v43, %v485_v56  ;;  %v1260_v43 = vadd.s32 48, %v1242_v27 }
 0x103   : > { %v508_v61 = vmin.f32 %v506_v45, %v1229_v58  ;;  %v420_v62 = vpop.f32.mrb[10].mxu0 }
 0x104   : > { %v487_v63 = vsub.f32 %v465_v60, %v420_v62  ;;  %v422_v1 = vpop.f32.mrb[11].mxu0 }
 0x105   : > { %v1232_v2 = vsub.f32 %v465_v60, %v422_v1 }
 0x106   : > { %v496_v3 = vmin.f32 %v494_v52, %v487_v63 }
 0x107   : > { %v509_v5 = vmin.f32 %v507_v54, %v1232_v2  ;;  %v426_v6 = vpop.f32.mrb[12].mxu0 }
 0x108   : > { %v489_v7 = vsub.f32 %v470_v4, %v426_v6  ;;  %v428_v8 = vpop.f32.mrb[13].mxu0 }
 0x109   : > { %v1235_v9 = vsub.f32 %v470_v4, %v428_v8 }
 0x10a   : > { %v497_v10 = vmin.f32 %v495_v59, %v489_v7 }
 0x10b   : > { %v510_v12 = vmin.f32 %v508_v61, %v1235_v9  ;;  %v432_v13 = vpop.f32.mrb[14].mxu0 }
 0x10c   : > { %v491_v14 = vsub.f32 %v475_v11, %v432_v13  ;;  %v434_v15 = vpop.f32.mrb[15].mxu0 }
 0x10d   : > { %v1238_v16 = vsub.f32 %v475_v11, %v434_v15  ;;  %v1084_v15 = vmov 1966171168  }
 0x10e   : > { %v498_v17 = vmin.f32 %v496_v3, %v491_v14 }
 0x10f   : > { %v511_v18 = vmin.f32 %v509_v5, %v1238_v16 }
 0x110   : > { %v499_v19 = vmin.f32 %v497_v10, %v498_v17 }
 0x111   : > { %v512_v20 = vmin.f32 %v510_v12, %v511_v18 }
 0x112   : > { %v500_v21 = vrot.slane %v499_v19, 4 }
 0x113   : > { %v513_v23 = vrot.slane %v512_v20, 4 }
 0x114   : > { %v501_v24 = vmin.f32 %v499_v19, %v500_v21 }
 0x115   : > { %v514_v25 = vmin.f32 %v512_v20, %v513_v23 }
 0x116   : > { %v502_v26 = vrot.slane %v501_v24, 2 }
 0x117   : > { %v515_v28 = vrot.slane %v514_v25, 2 }
 0x118   : > { %v503_v29 = vmin.f32 %v501_v24, %v502_v26 }
 0x119   : > { %v516_v30 = vmin.f32 %v514_v25, %v515_v28 }
 0x11a   : > { %v504_v31 = vrot.slane %v503_v29, 1 }
 0x11b   : > { %v517_v33 = vrot.slane %v516_v30, 1 }
 0x11c   : > { %v505_v39 = vmin.f32 %v503_v29, %v504_v31  ;;  %v1085_v29 = vmov 1.0|1.0  }
 0x11d   : > { %v518_v45 = vmin.f32 %v516_v30, %v517_v33 }
 0x11e   : > { %vm519_vm1 = vcmp.eq.f32.partialorder %v1205_v37, %v505_v39  ;;  %vm521_vm2 = vcmp.eq.f32.partialorder %v1217_v47, %v505_v39  ;;  %vm523_vm3 = vcmp.eq.f32.partialorder %v1207_v38, %v505_v39  ;;  %vm525_vm4 = vcmp.eq.f32.partialorder %v1219_v48, %v505_v39 }
 0x11f   : > { %vm527_vm5 = vcmp.eq.f32.partialorder %v485_v56, %v505_v39  ;;  %vm529_vm6 = vcmp.eq.f32.partialorder %v487_v63, %v505_v39  ;;  %vm531_vm7 = vcmp.eq.f32.partialorder %v489_v7, %v505_v39  ;;  %vm533_vm8 = vcmp.eq.f32.partialorder %v491_v14, %v505_v39 }
 0x120   : > { %v535_v46 = vsel %vm519_vm1, %v1242_v27, 64  ;;  %v537_v49 = vsel %vm521_vm2, %v1245_v32, 64  ;;  %v539_v52 = vsel %vm523_vm3, %v1248_v34, 64  ;;  %v541_v53 = vsel %vm525_vm4, %v1251_v35, 64 }
 0x121   : > { %v543_v37 = vsel %vm527_vm5, %v1254_v36, 64  ;;  %v545_v47 = vsel %vm529_vm6, %v1257_v41, 64  ;;  %v547_v38 = vsel %vm531_vm7, %v1260_v43, 64  ;;  %v549_v48 = vsel %vm533_vm8, %v1263_v44, 64 }
 0x122   : > { %vm551_vm9 = vcmp.lt.s32.totalorder %v535_v46, %v539_v52  ;;  %vm553_vm10 = vcmp.lt.s32.totalorder %v537_v49, %v541_v53  ;;  %vm520_vm11 = vcmp.eq.f32.partialorder %v1209_v40, %v518_v45  ;;  %vm522_vm12 = vcmp.eq.f32.partialorder %v1221_v50, %v518_v45 }
 0x123   : > { %v552_v54 = vsel %vm551_vm9, %v535_v46, %v539_v52  ;;  %v554_v55 = vsel %vm553_vm10, %v537_v49, %v541_v53  ;;  %vm524_vm13 = vcmp.eq.f32.partialorder %v1211_v42, %v518_v45  ;;  %vm526_vm14 = vcmp.eq.f32.partialorder %v1223_v51, %v518_v45 }
 0x124   : > { %vm555_vm15 = vcmp.lt.s32.totalorder %v552_v54, %v543_v37  ;;  %vm557_vm0 = vcmp.lt.s32.totalorder %v554_v55, %v545_v47  ;;  %vm528_vm1 = vcmp.eq.f32.partialorder %v1229_v58, %v518_v45  ;;  %vm530_vm2 = vcmp.eq.f32.partialorder %v1232_v2, %v518_v45 }
 0x125   : > { %v556_v56 = vsel %vm555_vm15, %v552_v54, %v543_v37  ;;  %v558_v57 = vsel %vm557_vm0, %v554_v55, %v545_v47  ;;  %vm532_vm3 = vcmp.eq.f32.partialorder %v1235_v9, %v518_v45  ;;  %vm534_vm4 = vcmp.eq.f32.partialorder %v1238_v16, %v518_v45 }
 0x126   : > { %vm559_vm5 = vcmp.lt.s32.totalorder %v556_v56, %v547_v38  ;;  %vm561_vm6 = vcmp.lt.s32.totalorder %v558_v57, %v549_v48  ;;  %v536_v59 = vsel %vm520_vm11, %v1242_v27, 64  ;;  %v538_v60 = vsel %vm522_vm12, %v1245_v32, 64 }
 0x127   : > { %v560_v61 = vsel %vm559_vm5, %v556_v56, %v547_v38  ;;  %v562_v62 = vsel %vm561_vm6, %v558_v57, %v549_v48  ;;  %v540_v63 = vsel %vm524_vm13, %v1248_v34, 64  ;;  %v542_v1 = vsel %vm526_vm14, %v1251_v35, 64 }
 0x128   : > { %vm563_vm7 = vcmp.lt.s32.totalorder %v560_v61, %v562_v62  ;;  %v544_v40 = vsel %vm528_vm1, %v1254_v36, 64  ;;  %vm574_vm8 = vcmp.lt.s32.totalorder %v536_v59, %v540_v63  ;;  %vm576_vm9 = vcmp.lt.s32.totalorder %v538_v60, %v542_v1 }
 0x129   : > { %v564_v3 = vsel %vm563_vm7, %v560_v61, %v562_v62  ;;  %v546_v4 = vsel %vm530_vm2, %v1257_v41, 64  ;;  %v575_v5 = vsel %vm574_vm8, %v536_v59, %v540_v63  ;;  %v577_v42 = vsel %vm576_vm9, %v538_v60, %v542_v1 }
 0x12a   : > { %v565_v50 = vrot.slane %v564_v3, 4  ;;  %v548_v51 = vsel %vm532_vm3, %v1260_v43, 64  ;;  %vm578_vm10 = vcmp.lt.s32.totalorder %v575_v5, %v544_v40  ;;  %vm580_vm11 = vcmp.lt.s32.totalorder %v577_v42, %v546_v4 }
 0x12b   : > { %v550_v58 = vsel %vm534_vm4, %v1263_v44, 64  ;;  %v579_v6 = vsel %vm578_vm10, %v575_v5, %v544_v40  ;;  %v581_v7 = vsel %vm580_vm11, %v577_v42, %v546_v4  ;;  %v789_v16 = vunpack.c.l.s4 %v1084_v15 }
 0x12c   : > { %vm566_vm12 = vcmp.lt.s32.totalorder %v564_v3, %v565_v50  ;;  %vm582_vm13 = vcmp.lt.s32.totalorder %v579_v6, %v548_v51  ;;  %vm584_vm14 = vcmp.lt.s32.totalorder %v581_v7, %v550_v58 }
 0x12d   : > { %v567_v8 = vsel %vm566_vm12, %v564_v3, %v565_v50  ;;  %v583_v10 = vsel %vm582_vm13, %v579_v6, %v548_v51  ;;  %v585_v11 = vsel %vm584_vm14, %v581_v7, %v550_v58  ;;  %v790_v19 = vunpack.c.0.s8 %v789_v16 }
 0x12e   : > { %v568_v2 = vrot.slane %v567_v8, 2  ;;  %vm586_vm15 = vcmp.lt.s32.totalorder %v583_v10, %v585_v11  ;;  %vm804_vm13 = vcmp.lt.s32.totalorder %v282_v22, 256  ;;  %v661_v22 = vpop.trf.xlu0 }
 0x12f   : > { %v587_v9 = vsel %vm586_vm15, %v583_v10, %v585_v11  ;;  %v793_v24 = vsub.s32 %v790_v19, %v1242_v27 }
 0x130   : > { %vm569_vm0 = vcmp.lt.s32.totalorder %v567_v8, %v568_v2  ;;  %v588_v13 = vrot.slane %v587_v9, 4 }
 0x131   : > { %v570_v12 = vsel %vm569_vm0, %v567_v8, %v568_v2 }
 0x132   : > { %v571_v14 = vrot.slane %v570_v12, 1  ;;  %vm589_vm1 = vcmp.lt.s32.totalorder %v587_v9, %v588_v13  ;;  %v662_v30 = vpop.trf.xlu0 }
 0x133   : > { %v590_v17 = vsel %vm589_vm1, %v587_v9, %v588_v13 }
 0x134   : > { %v591_v18 = vrot.slane %v590_v17, 2  ;;  %vm572_vm2 = vcmp.lt.s32.totalorder %v570_v12, %v571_v14 }
 0x135   : > { %v573_v21 = vsel %vm572_vm2, %v570_v12, %v571_v14 }
 0x136   : > { %vm592_vm3 = vcmp.lt.s32.totalorder %v590_v17, %v591_v18  ;;  %vm597_vm5 = vcmp.eq.s32.totalorder %v1242_v27, %v573_v21  ;;  %vm599_vm6 = vcmp.eq.s32.totalorder %v1245_v32, %v573_v21  ;;  %vm601_vm15 = vcmp.eq.s32.totalorder %v1248_v34, %v573_v21  ;;  %v663_v31 = vpop.trf.xlu0 }
 0x137   : > { %v593_v20 = vsel %vm592_vm3, %v590_v17, %v591_v18  ;;  %vm1014_vm12 = vmpackc.low %vm599_vm6, %vm597_vm5  ;;  %vm603_vm0 = vcmp.eq.s32.totalorder %v1251_v35, %v573_v21  ;;  %vm605_vm5 = vcmp.eq.s32.totalorder %v1254_v36, %v573_v21  ;;  %vm607_vm6 = vcmp.eq.s32.totalorder %v1257_v41, %v573_v21 }
 0x138   : > { %v594_v23 = vrot.slane %v593_v20, 1  ;;  %vm1018_vm3 = vmpackc.low %vm603_vm0, %vm601_vm15 }
 0x13a   : > { %vm595_vm4 = vcmp.lt.s32.totalorder %v593_v20, %v594_v23 }
 0x13b   : > { %v596_v25 = vsel %vm595_vm4, %v593_v20, %v594_v23 }
 0x13c   : > { %v787_v26 = vcombine.low %v573_v21, %v596_v25  ;;  %vm598_vm7 = vcmp.eq.s32.totalorder %v1242_v27, %v596_v25  ;;  %vm600_vm8 = vcmp.eq.s32.totalorder %v1245_v32, %v596_v25  ;;  %vm602_vm9 = vcmp.eq.s32.totalorder %v1248_v34, %v596_v25  ;;  %v664_v32 = vpop.trf.xlu0 }
 0x13d   : > { %vm1012_vm10 = vmpackc.low %vm600_vm8, %vm598_vm7  ;;  %vm604_vm11 = vcmp.eq.s32.totalorder %v1251_v35, %v596_v25  ;;  %vm606_vm1 = vcmp.eq.s32.totalorder %v1254_v36, %v596_v25  ;;  %vm608_vm2 = vcmp.eq.s32.totalorder %v1257_v41, %v596_v25  ;;  %vm610_vm7 = vcmp.eq.s32.totalorder %v1260_v43, %v596_v25 }
 0x13e   : > { %v794_v28 = vrot.slane %v787_v26, %v793_v24  ;;  %1013 = vmatprep.subr.msk.bf16.mxu1 %vm1012_vm10, %v1085_v29  ;;  %vm1016_vm14 = vmpackc.low %vm604_vm11, %vm602_vm9  ;;  %vm612_vm8 = vcmp.eq.s32.totalorder %v1263_v44, %v596_v25  ;;  %vm609_vm11 = vcmp.eq.s32.totalorder %v1260_v43, %v573_v21 }
 0x13f   : > { %1015 = vmatpush1.bf16.msk.msra.mxu1 %vm1014_vm12, %v1085_v29  ;;  %vm1020_vm4 = vmpackc.low %vm608_vm2, %vm606_vm1  ;;  %vm611_vm12 = vcmp.eq.s32.totalorder %v1263_v44, %v573_v21 }
 0x140   : > { %v801_v27 = vrot.slane %v794_v28, %v793_v24  ;;  %1017 = vmatprep.subr.msk.bf16.mxu1 %vm1016_vm14, %v1085_v29  ;;  %vm1022_vm9 = vmpackc.low %vm607_vm6, %vm605_vm5  ;;  %vm677_vm14 = vcmask 523264  }
 0x141   : > { %vm1024_vm10 = vmpackc.low %vm612_vm8, %vm610_vm7 }
 0x142   : > { %806 = vst.msk [vmem:[%s265_s13] sm:$0x3] %vm804_vm13, %v801_v27  ;;  %vm1026_vm13 = vmpackc.low %vm611_vm12, %vm609_vm11 }
 0x143   : > { %1019 = vmatpush1.bf16.msk.msra.mxu1 %vm1018_vm3, %v1085_v29 }
 0x144   : > { %1021 = vmatprep.subr.msk.bf16.mxu1 %vm1020_vm4, %v1085_v29 }
 0x147   : > { %1023 = vmatpush1.bf16.msk.msra.mxu1 %vm1022_vm9, %v1085_v29 }
 0x148   : > { %1025 = vmatprep.subr.msk.bf16.mxu1 %vm1024_vm10, %v1085_v29 }
 0x14b   : > { %1027 = vmatpush1.bf16.msk.msra.mxu1 %vm1026_vm13, %v1085_v29 }
 0x14e   : > { %996 = vmatmul.mubr.msk.f32.vlgmr.msra.gmra.mrb[0].mxu1 %vm677_vm14, %v661_v22 }
 0x14f   : > { %760 = vmatprep.mubr.f32.mxu1 %v1082_v0 }
 0x152   : > { %997 = vmatmul.mubr.msk.f32.gmra.mrb[2].mxu1 %vm677_vm14, %v662_v30 }
 0x153   : > { %766 = vmatprep.mubr.f32.mxu1 %v1082_v0 }
 0x156   : > { %998 = vmatmul.mubr.msk.f32.gmra.mrb[4].mxu1 %vm677_vm14, %v663_v31 }
 0x157   : > { %772 = vmatprep.mubr.f32.mxu1 %v1082_v0 }
 0x15a   : > { %999 = vmatmul.mubr.msk.f32.gmra.mrb[6].mxu1 %vm677_vm14, %v664_v32 }
 0x221   : > { %v756_v33 = vpop.f32.mrb[0].mxu1 }
 0x222   : > { %779 = vst [vmem:[%s255_s20] sm:$0xff] %v756_v33  ;;  %v758_v34 = vpop.f32.mrb[1].mxu1 }
 0x223   : > { %780 = vst [vmem:[%s255_s20 + $0x8] sm:$0xff] %v758_v34 }
 0x225   : > { %v762_v35 = vpop.f32.mrb[2].mxu1 }
 0x226   : > { %781 = vst [vmem:[%s255_s20 + $0x10] sm:$0xff] %v762_v35  ;;  %v764_v36 = vpop.f32.mrb[3].mxu1 }
 0x227   : > { %782 = vst [vmem:[%s255_s20 + $0x18] sm:$0xff] %v764_v36 }
 0x229   : > { %v768_v39 = vpop.f32.mrb[4].mxu1 }
 0x22a   : > { %783 = vst [vmem:[%s255_s20 + $0x20] sm:$0xff] %v768_v39  ;;  %v770_v41 = vpop.f32.mrb[5].mxu1 }
 0x22b   : > { %784 = vst [vmem:[%s255_s20 + $0x28] sm:$0xff] %v770_v41 }
 0x22d   : > { %v774_v43 = vpop.f32.mrb[6].mxu1 }
 0x22e   : > { %785 = vst [vmem:[%s255_s20 + $0x30] sm:$0xff] %v774_v43  ;;  %v776_v0 = vpop.f32.mrb[7].mxu1 }
 0x22f   : > { %786 = vst [vmem:[%s255_s20 + $0x38] sm:$0xff] %v776_v0 }
 0x230 PF: > { %s15_s17 = sadd.s32 1, %s1080_s17   ;;  %s1354_s15 = smov %s1076_s16 }
 0x231   : > { %p12_p6 = scmp.ge.s32.totalorder %s15_s17, 4   ;;  %s1355_s16 = smov %s1357_s18 }
 0x233   :  { %14 = sbr.rel (!%p12_p6) target bundleno = 2 (0x2), region = 74 }

</bundles_post_ra>
